<compile_context>
chip_gen: v6e
topology: v6e:2x2x1
jax: 0.10.0
libtpu: 0.0.40
codegen_flags: <defaults>
</compile_context>

<pallas_src>
import functools

import jax
import jax.numpy as jnp
from jax import lax
from jax.experimental import pallas as pl
from jax.experimental.pallas import tpu as pltpu


_VMEM_TILE_BUDGET = 40 * 1024 * 1024  # tile-selection budget; fits v7x's 64 MiB VMEM


def _round_up(v, m):
    return ((v + m - 1) // m) * m


def _vmem_limit_bytes(need):
    # explicit scoped-VMEM limit: actual need + margin, clamped to [32 MiB, 64 MiB]
    return int(min(max(need + (8 << 20), 32 << 20), 64 << 20))


# ---------------------------------------------------------------------------
# kernels
# ---------------------------------------------------------------------------

def _pointwise_conv_kernel(x_ref, w_ref, b_ref, o_ref, *, compute_dtype):
    # x_ref: (1, Cin, THW)   w_ref: (Cout_p, Cin)   b_ref: (Cout_p, 1)   o_ref: (1, Cout_p, THW)
    x = x_ref[0].astype(compute_dtype)
    acc = jnp.dot(w_ref[...], x, preferred_element_type=jnp.float32)
    o_ref[0] = jnp.maximum(acc + b_ref[...], 0.0).astype(o_ref.dtype)


def _patches_matmul_kernel(p_ref, w_ref, b_ref, o_ref, *, compute_dtype):
    # p_ref: (TM, K)   w_ref: (K, TN)   b_ref: (1, TN)   o_ref: (TM, TN)
    acc = jnp.dot(p_ref[...].astype(compute_dtype), w_ref[...],
                  preferred_element_type=jnp.float32)
    o_ref[...] = jnp.maximum(acc + b_ref[...], 0.0).astype(o_ref.dtype)


# ---------------------------------------------------------------------------
# 1x1 / stride 1 / pad 0 fast path: no im2col, no layout transposes
# ---------------------------------------------------------------------------

def _pointwise_path(x, w_mat, bias, compute_dtype):
    n, cin, h, w = x.shape
    cout = w_mat.shape[0]
    hw = h * w

    cout_p = _round_up(cout, 8)  # sublane alignment of the output rows
    if cout_p != cout:
        w_mat = jnp.pad(w_mat, ((0, cout_p - cout), (0, 0)))
        bias = jnp.pad(bias, ((0, cout_p - cout),))
    wk = w_mat.astype(compute_dtype)                       # (Cout_p, Cin)
    b2 = bias.reshape(cout_p, 1).astype(jnp.float32)       # (Cout_p, 1)
    x3 = x.reshape(n, cin, hw)                             # channels-first view, no copy needed

    in_b = jnp.dtype(x.dtype).itemsize
    out_b = jnp.dtype(x.dtype).itemsize
    w_b = jnp.dtype(compute_dtype).itemsize

    fixed = 2 * cout_p * cin * w_b + 2 * cout_p * 4
    per_col = 2 * cin * in_b + 2 * cout_p * out_b          # double-buffered x tile + out tile
    thw = max((_VMEM_TILE_BUDGET - fixed) // per_col, 128)
    thw = min((thw // 128) * 128, 2048)
    if hw >= 128:
        thw = min(thw, (hw // 128) * 128)                  # lane-dense; last block may be partial
    else:
        thw = hw                                           # full (small) spatial dim

    n_hw = pl.cdiv(hw, thw)
    need = 2 * cin * thw * in_b + 2 * cout_p * thw * out_b + fixed

    out = pl.pallas_call(
        functools.partial(_pointwise_conv_kernel, compute_dtype=compute_dtype),
        out_shape=jax.ShapeDtypeStruct((n, cout_p, hw), x.dtype),
        grid_spec=pltpu.PrefetchScalarGridSpec(
            num_scalar_prefetch=0,
            grid=(n, n_hw),
            in_specs=[
                pl.BlockSpec((1, cin, thw), lambda b, j: (b, 0, j)),
                pl.BlockSpec((cout_p, cin), lambda b, j: (0, 0)),
                pl.BlockSpec((cout_p, 1), lambda b, j: (0, 0)),
            ],
            out_specs=pl.BlockSpec((1, cout_p, thw), lambda b, j: (b, 0, j)),
        ),
        compiler_params=pltpu.CompilerParams(
            dimension_semantics=("parallel", "parallel"),
            vmem_limit_bytes=_vmem_limit_bytes(need),
        ),
    )(x3, wk, b2)

    if cout_p != cout:
        out = out[:, :cout]
    return out.reshape(n, cout, h, w)                      # already NCHW — no transpose


# ---------------------------------------------------------------------------
# general path: im2col + (M, K) @ (K, Cout_p)
# ---------------------------------------------------------------------------

def _im2col_nchw(x, kh, kw, stride, padding):
    """x: (N, C, H, W) -> patches (N*OH*OW, C*kh*kw) with K ordered (C, kh, kw)."""
    n, c, h, w = x.shape
    xp = jnp.pad(x, ((0, 0), (0, 0), (padding, padding), (padding, padding)))
    oh = (h + 2 * padding - kh) // stride + 1
    ow = (w + 2 * padding - kw) // stride + 1
    cols = []
    for i in range(kh):
        for j in range(kw):
            cols.append(
                lax.slice(
                    xp,
                    (0, 0, i, j),
                    (n, c, i + (oh - 1) * stride + 1, j + (ow - 1) * stride + 1),
                    (1, 1, stride, stride),
                )
            )  # (N, C, OH, OW)
    p = jnp.stack(cols, axis=2)              # (N, C, kh*kw, OH, OW)
    p = p.transpose(0, 3, 4, 1, 2)           # (N, OH, OW, C, kh*kw)
    return p.reshape(n * oh * ow, c * kh * kw), oh, ow


def _general_path(x, w_mat, bias, kh, kw, stride, padding, compute_dtype):
    n, cin, h, w = x.shape
    cout = w_mat.shape[0]

    patches, oh, ow = _im2col_nchw(x, kh, kw, stride, padding)   # (M, K)
    patches = patches.astype(compute_dtype)                      # cast fuses into im2col copy
    m, k = patches.shape

    cout_p = _round_up(cout, 128)                                # lane-dense output stores
    if cout_p != cout:
        w_mat = jnp.pad(w_mat, ((0, cout_p - cout), (0, 0)))
        bias = jnp.pad(bias, ((0, cout_p - cout),))
    wk = w_mat.T.astype(compute_dtype)                           # (K, Cout_p)
    b2 = bias.reshape(1, cout_p).astype(jnp.float32)

    in_b = jnp.dtype(compute_dtype).itemsize
    out_b = jnp.dtype(x.dtype).itemsize

    tn = min(cout_p, 512)
    while tn > 128 and 2 * k * tn * in_b > _VMEM_TILE_BUDGET // 2:
        tn -= 128

    fixed = 2 * k * tn * in_b + 2 * tn * 4
    per_row = 2 * k * in_b + 2 * tn * out_b
    tm = max((_VMEM_TILE_BUDGET - fixed) // per_row, 8)
    tm = min((tm // 8) * 8, 1024)
    if m >= 8:
        tm = min(tm, (m // 8) * 8)
    else:
        tm = m

    need = 2 * tm * k * in_b + 2 * tm * tn * out_b + fixed

    out_flat = pl.pallas_call(
        functools.partial(_patches_matmul_kernel, compute_dtype=compute_dtype),
        out_shape=jax.ShapeDtypeStruct((m, cout_p), x.dtype),
        grid_spec=pltpu.PrefetchScalarGridSpec(
            num_scalar_prefetch=0,
            grid=(pl.cdiv(m, tm), pl.cdiv(cout_p, tn)),           # no explicit M padding
            in_specs=[
                pl.BlockSpec((tm, k), lambda i, j: (i, 0)),
                pl.BlockSpec((k, tn), lambda i, j: (0, j)),
                pl.BlockSpec((1, tn), lambda i, j: (0, j)),
            ],
            out_specs=pl.BlockSpec((tm, tn), lambda i, j: (i, j)),
        ),
        compiler_params=pltpu.CompilerParams(
            dimension_semantics=("parallel", "parallel"),
            vmem_limit_bytes=_vmem_limit_bytes(need),
        ),
    )(patches, wk, b2)

    out = out_flat.reshape(n, oh, ow, cout_p)[..., :cout]
    # TODO(synk): skip this transpose if the consumer accepts NHWC.
    return out.transpose(0, 3, 1, 2)                              # back to NCHW


# ---------------------------------------------------------------------------
# public entry point (matches ConvModule.forward in eval mode)
# ---------------------------------------------------------------------------

@functools.partial(jax.jit,
                   static_argnames=("stride", "padding", "groups", "compute_dtype"))
def conv_module_forward(x, weight, gamma, beta, running_mean, running_var,
                        stride=1, padding=0, groups=1, eps=1e-5,
                        compute_dtype=jnp.bfloat16):
    """x: (N, Cin, H, W) NCHW; weight: (Cout, Cin, KH, KW) OIHW (groups=1, no conv bias)."""
    if groups != 1:
        # TODO(synk): grouped convolution needs a block-diagonal / grouped matmul.
        raise NotImplementedError("groups > 1 is not implemented")

    cout, cin_w, kh, kw = weight.shape

    # Fold BatchNorm (eval mode) into the conv: scale -> weight, shift -> bias.
    scale = gamma.astype(jnp.float32) * lax.rsqrt(running_var.astype(jnp.float32) + eps)
    bias = beta.astype(jnp.float32) - running_mean.astype(jnp.float32) * scale
    w_mat = weight.reshape(cout, cin_w * kh * kw).astype(jnp.float32) * scale[:, None]

    if kh == 1 and kw == 1 and stride == 1 and padding == 0:
        return _pointwise_path(x, w_mat, bias, compute_dtype)
    return _general_path(x, w_mat, bias, kh, kw, stride, padding, compute_dtype)


# ---------------------------------------------------------------------------
# reference + demo
# ---------------------------------------------------------------------------

def _reference(x, weight, gamma, beta, running_mean, running_var, stride, padding, eps=1e-5):
    y = lax.conv_general_dilated(
        x, weight, window_strides=(stride, stride),
        padding=[(padding, padding), (padding, padding)],
        dimension_numbers=("NCHW", "OIHW", "NCHW"))
    scale = gamma / jnp.sqrt(running_var + eps)
    s = scale.reshape(1, -1, 1, 1)
    b = (beta - running_mean * scale).reshape(1, -1, 1, 1)
    return jnp.maximum(y * s + b, 0.0)


if __name__ == "__main__":
    key = jax.random.PRNGKey(0)
    k1, k2, k3, k4, k5, k6, k7 = jax.random.split(key, 7)

    # SegFormer-head style usage: ConvModule(in_channels=4*dim, out_channels=dim, kernel_size=1)
    batch, in_channels, out_channels, spatial = 2, 32, 8, 16

    x = jax.random.normal(k1, (batch, in_channels, spatial, spatial), dtype=jnp.float32)
    gamma = jax.random.normal(k3, (out_channels,), dtype=jnp.float32) * 0.1 + 1.0
    beta = jax.random.normal(k4, (out_channels,), dtype=jnp.float32) * 0.1
    running_mean = jax.random.normal(k5, (out_channels,), dtype=jnp.float32) * 0.1
    running_var = jnp.abs(jax.random.normal(k6, (out_channels,), dtype=jnp.float32)) + 1.0

    # 1) pointwise (kernel_size=1) fast path — the actual SegFormer-head configuration.
    w1 = jax.random.normal(
        k2, (out_channels, in_channels, 1, 1), dtype=jnp.float32) * 0.1
    out1 = conv_module_forward(x, w1, gamma, beta, running_mean, running_var,
                               stride=1, padding=0)
    out1 = jax.block_until_ready(out1)
    ref1 = _reference(x, w1, gamma, beta, running_mean, running_var, 1, 0)
    assert out1.shape == (batch, out_channels, spatial, spatial)
    assert jnp.allclose(out1, ref1, atol=3e-2, rtol=3e-2), \
        float(jnp.max(jnp.abs(out1 - ref1)))

    # 2) general path (3x3 conv, padding=1) to exercise the im2col kernel as well.
    w3 = jax.random.normal(
        k7, (out_channels, in_channels, 3, 3), dtype=jnp.float32) * 0.1
    out3 = conv_module_forward(x, w3, gamma, beta, running_mean, running_var,
                               stride=1, padding=1)
    out3 = jax.block_until_ready(out3)
    ref3 = _reference(x, w3, gamma, beta, running_mean, running_var, 1, 1)
    assert out3.shape == (batch, out_channels, spatial, spatial)
    assert jnp.allclose(out3, ref3, atol=5e-2, rtol=5e-2), \
        float(jnp.max(jnp.abs(out3 - ref3)))

    # 3) strided general path with non-multiple-of-128 spatial (partial edge blocks).
    spatial2 = 20
    x2 = jax.random.normal(k1, (batch, in_channels, spatial2, spatial2), dtype=jnp.float32)
    out4 = conv_module_forward(x2, w3, gamma, beta, running_mean, running_var,
                               stride=2, padding=1)
    out4 = jax.block_until_ready(out4)
    ref4 = _reference(x2, w3, gamma, beta, running_mean, running_var, 2, 1)
    assert out4.shape == ref4.shape
    assert jnp.allclose(out4, ref4, atol=5e-2, rtol=5e-2), \
        float(jnp.max(jnp.abs(out4 - ref4)))

    print("KERNEL_OK")
</pallas_src>

<mosaic_0001>
module attributes {stable_mosaic.version = 11 : i64} {
  func.func @_pointwise_conv_kernel(%arg0: i32, %arg1: i32, %arg2: memref<1x32x256xf32, #tpu.memory_space<vmem>>, %arg3: memref<8x32xbf16, #tpu.memory_space<vmem>>, %arg4: memref<8x1xf32, #tpu.memory_space<vmem>>, %arg5: memref<1x8x256xf32, #tpu.memory_space<vmem>>) attributes {dimension_semantics = [#tpu.dimension_semantics<parallel>, #tpu.dimension_semantics<parallel>], iteration_bounds = array<i64: 2, 1>, scalar_prefetch = 0 : i64, scratch_operands = 0 : i64, tpu.core_type = #tpu.core_type<tc>, window_params = [{transform_indices = @transform_0, window_bounds = array<i64: 1, 32, 256>}, {pipeline_mode = #tpu.pipeline_mode<synchronous>, transform_indices = @transform_1, window_bounds = array<i64: 8, 32>}, {pipeline_mode = #tpu.pipeline_mode<synchronous>, transform_indices = @transform_2, window_bounds = array<i64: 8, 1>}, {transform_indices = @transform_3, window_bounds = array<i64: 1, 8, 256>}]} {
    %c0 = arith.constant 0 : index
    %c0_0 = arith.constant 0 : index
    %c0_1 = arith.constant 0 : index
    %0 = vector.load %arg2[%c0, %c0_0, %c0_1] : memref<1x32x256xf32, #tpu.memory_space<vmem>>, vector<1x32x256xf32>
    %1 = vector.shape_cast %0 : vector<1x32x256xf32> to vector<32x256xf32>
    %2 = arith.truncf %1 : vector<32x256xf32> to vector<32x256xbf16>
    %c0_2 = arith.constant 0 : index
    %c0_3 = arith.constant 0 : index
    %3 = vector.load %arg3[%c0_2, %c0_3] : memref<8x32xbf16, #tpu.memory_space<vmem>>, vector<8x32xbf16>
    %cst = arith.constant dense<0.000000e+00> : vector<8x256xf32>
    %4 = tpu.matmul %3, %2, %cst {dimension_numbers = #tpu.dot_dimension_numbers<[1], [0], [0], [1], [0, 0, 1, 1], [], []>} : vector<8x32xbf16>, vector<32x256xbf16>, vector<8x256xf32> -> vector<8x256xf32>
    %c0_4 = arith.constant 0 : index
    %c0_5 = arith.constant 0 : index
    %5 = vector.load %arg4[%c0_4, %c0_5] : memref<8x1xf32, #tpu.memory_space<vmem>>, vector<8x1xf32>
    %6 = vector.broadcast %5 : vector<8x1xf32> to vector<8x256xf32>
    %7 = arith.addf %4, %6 : vector<8x256xf32>
    %cst_6 = arith.constant 0.000000e+00 : f32
    %8 = vector.broadcast %cst_6 : f32 to vector<8x256xf32>
    %9 = arith.maximumf %7, %8 : vector<8x256xf32>
    %c0_7 = arith.constant 0 : index
    %c0_8 = arith.constant 0 : index
    %c0_9 = arith.constant 0 : index
    %10 = vector.load %arg5[%c0_7, %c0_8, %c0_9] : memref<1x8x256xf32, #tpu.memory_space<vmem>>, vector<1x8x256xf32>
    %11 = vector.shape_cast %10 : vector<1x8x256xf32> to vector<8x256xf32>
    %12 = vector.shape_cast %9 : vector<8x256xf32> to vector<1x8x256xf32>
    tpu.vector_store %arg5[%c0_7, %c0_8, %c0_9], %12 {strides = array<i32>} : memref<1x8x256xf32, #tpu.memory_space<vmem>>, vector<1x8x256xf32>,
    return
  }
  func.func @transform_0(%arg0: i32, %arg1: i32) -> (i32, i32, i32) {
    %c0_i32 = arith.constant 0 : i32
    %c0_i32_0 = arith.constant 0 : i32
    return %arg0, %c0_i32, %arg1 : i32, i32, i32
  }
  func.func @transform_1(%arg0: i32, %arg1: i32) -> (i32, i32) {
    %c0_i32 = arith.constant 0 : i32
    %c0_i32_0 = arith.constant 0 : i32
    %c0_i32_1 = arith.constant 0 : i32
    return %c0_i32, %c0_i32_0 : i32, i32
  }
  func.func @transform_2(%arg0: i32, %arg1: i32) -> (i32, i32) {
    %c0_i32 = arith.constant 0 : i32
    %c0_i32_0 = arith.constant 0 : i32
    %c0_i32_1 = arith.constant 0 : i32
    return %c0_i32, %c0_i32_0 : i32, i32
  }
  func.func @transform_3(%arg0: i32, %arg1: i32) -> (i32, i32, i32) {
    %c0_i32 = arith.constant 0 : i32
    %c0_i32_0 = arith.constant 0 : i32
    return %arg0, %c0_i32, %arg1 : i32, i32, i32
  }
}

</mosaic_0001>

<bundles_post_ra>
// kernel: conv_module_forward.1
= control target key start
LH: loop header
LB: loop body
LE: loop exit
PB: predicated region body
PF: predicated region fallthrough
CT: control target
= control target key end

     0   :  { %s451_s12 = smov 0   ;;  %s453_s13 = smov 0   ;;  %s490_s0 = inlined_call_operand.vmem [shape: f32[2,32,256], index: 0, kind: input, shape index: {}]   ;;  %s491_s1 = inlined_call_operand.vmem [shape: bf16[8,32], index: 1, kind: input, shape index: {}]   ;;  %s492_s2 = inlined_call_operand.vmem [shape: f32[8,1], index: 2, kind: input, shape index: {}]   ;;  %s493_s3 = inlined_call_operand.vmem [shape: f32[2,8,256], index: 3, kind: output, shape index: {}]  }
   0x1   :  { %s455_s14 = smov 0  }
   0x2 LB: > { %s25_s15 = sadd.s32 1, %s424_s13  ;;  %p370_p0 = scmp.ge.s32.totalorder %s428_s14, 1  ;;  %s428_s14 = sphi %s455_s14, %s13_s14   ;;  %s424_s13 = sphi %s453_s13, %s495_s13   ;;  %s420_s12 = sphi %s451_s12, %s494_s12  }
   0x3   : > { %p27_p1 = scmp.ge.s32.totalorder %s25_s15, 2  ;;  %p158_p2 = scmp.lt.s32.totalorder %s428_s14, 3 }
   0x5   : > { %s497_s15 = smov (%p27_p1, %s25_s15), 0  ;;  %p159_p3 = pnand %p370_p0, %p158_p2 }
   0x6   : > { %p191_p4 = scmp.lt.s32.totalorder (!%p159_p3), %s420_s12, 1 }
   0x7   : > { %162 = sbr.rel (%p159_p3) target bundleno = 226 (0xe2), region = 32 }
   0xc   : > { %v224_v0 = vld [vmem:[%s492_s2] sm:$0xff]  ;;  %v430_v1 = vmov 0   ;;  %s499_s12 = smov (!%p191_p4, %s420_s12), 1  ;;  %vm230_vm0 = vcmask 261120  }
   0xd   : > { %266 = vmatprep.mubr.bf16.mxu0 %v430_v1  ;;  %405 = vset.pattern.permute.xlu0 %v430_v1  ;;  %s378_s18 = sshll.u32 %s499_s12, 6  ;;  %v223_v14 = vld [vmem:[%s491_s1] sm:$0xf]  ;;  %s379_s24 = sshll.u32 %s499_s12, 4 }
   0xe   : > { %227 = vperm.xlu0 %405, %v224_v0   ;;  %s198_s21 = scalar_lea.vmem %s490_s0, %s378_s18  ;;  %s208_s27 = scalar_lea.vmem %s493_s3, %s379_s24 }
   0xf   : > { %v216_v2 = vld [vmem:[%s198_s21 + $0x28] sm:$0xff]  ;;  %v218_v3 = vld [vmem:[%s198_s21 + $0x38] sm:$0xff]  ;;  %v215_v4 = vld [vmem:[%s198_s21 + $0x20] sm:$0xff] }
  0x10   : > { %v222_v5 = vpack.c.bf16 %v218_v3, %v216_v2  ;;  %v217_v6 = vld [vmem:[%s198_s21 + $0x30] sm:$0xff]  ;;  %v212_v7 = vld [vmem:[%s198_s21 + $0x8] sm:$0xff]  ;;  %v214_v8 = vld [vmem:[%s198_s21 + $0x18] sm:$0xff] }
  0x11   : > { %v221_v9 = vpack.c.bf16 %v217_v6, %v215_v4  ;;  %v220_v10 = vpack.c.bf16 %v214_v8, %v212_v7  ;;  %v211_v11 = vld [vmem:[%s198_s21] sm:$0xff]  ;;  %v213_v12 = vld [vmem:[%s198_s21 + $0x10] sm:$0xff] }
  0x12   : > { %246 = vmatprep.subr.bf16.mxu0 %v222_v5  ;;  %v219_v13 = vpack.c.bf16 %v213_v12, %v211_v11 }
  0x13   : > { %247 = vmatpush1.bf16.msra.mxu0 %v221_v9 }
  0x14   : > { %248 = vmatprep.subr.bf16.mxu0 %v220_v10 }
  0x17   : > { %249 = vmatpush1.bf16.msra.mxu0 %v219_v13 }
  0x1a   : > { %375 = vmatmul.mubr.msk.bf16.vlgmr.msra.gmra.mxu0 %vm230_vm0, %v223_v14 }
  0x89   : > { %v228_v15 = vpop.permute.xlu0 %227 }
  0xda   : > { %v268_v16 = vpop.f32.mrf.mxu0 }
  0xdb   : > { %v269_v17 = vadd.f32 %v268_v16, %v228_v15 }
  0xdc   : > { %v270_v18 = vpop.f32.mrf.mxu0 }
  0xdd   : > { %v275_v19 = vmax.f32 %v269_v17, 0.0  ;;  %v271_v20 = vadd.f32 %v270_v18, %v228_v15 }
  0xde   : > { %v272_v21 = vpop.f32.mrf.mxu0 }
  0xdf   : > { %277 = vst [vmem:[%s208_s27] sm:$0xff] %v275_v19  ;;  %v276_v22 = vmax.f32 %v271_v20, 0.0 }
  0xe0   : > { %v273_v23 = vpop.f32.mrf.mxu0 }
  0xe1   : > { %278 = vst [vmem:[%s208_s27 + $0x8] sm:$0xff] %v276_v22 }
  0xe2 PF: > { %s13_s14 = sadd.s32 1, %s428_s14   ;;  %s494_s12 = smov %s424_s13 }
  0xe3   : > { %p10_p5 = scmp.ge.s32.totalorder %s13_s14, 4   ;;  %s495_s13 = smov %s497_s15 }
  0xe5   :  { %12 = sbr.rel (!%p10_p5) target bundleno = 2 (0x2), region = 62 }

</bundles_post_ra>
